<compile_context>
chip_gen: v6e
topology: v6e:2x2x1
jax: 0.10.0
libtpu: 0.0.40
codegen_flags: <defaults>
</compile_context>

<pallas_src>
import functools
import math

import jax
import jax.numpy as jnp
import numpy as np
from jax import lax
from jax.experimental import pallas as pl
from jax.experimental.pallas import tpu as pltpu

_SUBLANE = 8    # f32 sublane tile
_LANE = 128     # lane tile


def _round_up(n, m):
    return ((n + m - 1) // m) * m


def _pad2d(a, rows, cols):
    return jnp.pad(a, ((0, rows - a.shape[0]), (0, cols - a.shape[1])))


@functools.lru_cache(maxsize=None)
def _vmem_limit_bytes():
    """Per-generation VMEM budget: ~80% of physical, clamped to a safe range
    (v5e/v6e: ~107 MiB of 128; v7x: ~51 MiB of 64)."""
    try:
        cap = int(pltpu.get_tpu_info().vmem_capacity_bytes)
    except Exception:                       # noqa: BLE001 - conservative fallback
        cap = 64 * 1024 * 1024
    return int(min(max(cap * 0.8, 32 * 1024 * 1024), 112 * 1024 * 1024))


# -----------------------------------------------------------------------------
# Tiled GEMM: out = x @ w + b   (weight axis outermost, K-tiled, f32 accumulate)
# -----------------------------------------------------------------------------
def linear_kernel(x_ref, w_ref, b_ref, o_ref, acc_ref):
    @pl.when(pl.program_id(2) == 0)
    def _():
        acc_ref[...] = jnp.zeros_like(acc_ref)

    acc_ref[...] += jnp.dot(x_ref[...], w_ref[...],
                            preferred_element_type=jnp.float32)

    @pl.when(pl.program_id(2) == pl.num_programs(2) - 1)
    def _():
        o_ref[...] = (acc_ref[...] + b_ref[...]).astype(o_ref.dtype)


def linear(x, w, b, *, out_dtype=jnp.float32, tm=256, tn=1024, tk=1024):
    """x: (M, K) @ w: (K, N) + b: (1, N) -> (M, N)."""
    M, K = x.shape
    N = w.shape[1]
    # Aligned tiles; pad M/N/K up to tile multiples (zero padding is inert and
    # sliced off below).  No divisor search -> no degenerate 128-wide tiles or
    # odd non-MXU-aligned row tiles.
    tm = min(tm, _round_up(M, _SUBLANE))
    tn = min(tn, _round_up(N, _LANE))
    tk = min(tk, _round_up(K, _LANE))
    Mp, Np, Kp = _round_up(M, tm), _round_up(N, tn), _round_up(K, tk)
    if (Mp, Kp) != (M, K):
        x = _pad2d(x, Mp, Kp)
    if (Kp, Np) != (K, N):
        w = _pad2d(w, Kp, Np)
    if Np != N:
        b = _pad2d(b, 1, Np)

    cost = pl.CostEstimate(
        flops=2 * Mp * Np * Kp,
        transcendentals=0,
        bytes_accessed=int(Mp * Kp * x.dtype.itemsize
                           + Kp * Np * w.dtype.itemsize
                           + Np * b.dtype.itemsize
                           + Mp * Np * jnp.dtype(out_dtype).itemsize))

    out = pl.pallas_call(
        linear_kernel,
        # Weight/vocab axis outermost: when Kp == tk the (tk, tn) weight block
        # is revisited (not re-fetched) across the whole inner row loop.
        grid=(Np // tn, Mp // tm, Kp // tk),
        in_specs=[
            pl.BlockSpec((tm, tk), lambda j, i, k: (i, k)),
            pl.BlockSpec((tk, tn), lambda j, i, k: (k, j)),
            pl.BlockSpec((1, tn), lambda j, i, k: (0, j)),
        ],
        out_specs=pl.BlockSpec((tm, tn), lambda j, i, k: (i, j)),
        out_shape=jax.ShapeDtypeStruct((Mp, Np), out_dtype),
        scratch_shapes=[pltpu.VMEM((tm, tn), jnp.float32)],
        compiler_params=pltpu.CompilerParams(
            dimension_semantics=("parallel", "parallel", "arbitrary"),
            vmem_limit_bytes=_vmem_limit_bytes()),
        cost_estimate=cost,
    )(x, w, b)
    return out[:M, :N]


# -----------------------------------------------------------------------------
# GRU recurrence: time-blocked grid, hidden carried in VMEM, U weights resident
# -----------------------------------------------------------------------------
def gru_layer_kernel(xw_ref, h0_ref, u_rz_hbm, u_h_hbm, h_out_ref,
                     h_carry, u_rz_v, u_h_v):
    """Tt timesteps of GRU_Hidden per grid step:
         pre  = x W_[r|z|h] + b_[r|z|h]                (precomputed, xw_ref)
         r, z = sigmoid(pre[:, :2H] + h @ U_rz)
         h~   = tanh   (pre[:, 2H:] + (r*h) @ U_h)
         h'   = (1 - z) * h + z * h~
    """
    hp = h_carry.shape[-1]

    @pl.when(pl.program_id(1) == 0)
    def _():
        # One-time, single-buffered weight load into VMEM scratch (stays
        # resident for the whole sequence; no double-buffer footprint).
        pltpu.sync_copy(u_rz_hbm, u_rz_v)
        pltpu.sync_copy(u_h_hbm, u_h_v)
        h_carry[...] = h0_ref[...]

    def step(t, h):
        pre = xw_ref[t].astype(jnp.float32)                          # (Bb, 3Hp)
        rz = jax.nn.sigmoid(
            pre[:, :2 * hp]
            + jnp.dot(h.astype(jnp.bfloat16), u_rz_v[...],
                      preferred_element_type=jnp.float32))
        r = rz[:, :hp]
        z = rz[:, hp:]
        h_cand = jnp.tanh(
            pre[:, 2 * hp:]
            + jnp.dot((r * h).astype(jnp.bfloat16), u_h_v[...],
                      preferred_element_type=jnp.float32))
        h_new = (1.0 - z) * h + z * h_cand
        h_out_ref[t] = h_new.astype(h_out_ref.dtype)
        return h_new

    h_final = lax.fori_loop(0, xw_ref.shape[0], step, h_carry[...], unroll=True)
    h_carry[...] = h_final


def _largest_divisor(n, cap):
    best = 1
    for t in range(1, min(n, cap) + 1):
        if n % t == 0:
            best = t
    return best


def gru_layer(xw, h0, u_rz, u_h, *, time_block=8):
    """xw: (S, Bp, 3*Hp) bf16, h0: (Bp, Hp) f32 -> per-step hidden (S, Bp, Hp) bf16."""
    S, Bp, H3 = xw.shape
    Hp = h0.shape[1]
    Tt = _largest_divisor(S, time_block)          # timesteps per grid step
    n_bb = 2 if (Bp % 16 == 0) else 1             # batch split -> 2nd TC on v7x
    Bb = Bp // n_bb

    return pl.pallas_call(
        gru_layer_kernel,
        grid=(n_bb, S // Tt),
        in_specs=[
            pl.BlockSpec((Tt, Bb, H3), lambda b, t: (t, b, 0)),   # pre slab
            pl.BlockSpec((Bb, Hp), lambda b, t: (b, 0)),          # h0
            pl.BlockSpec(memory_space=pl.ANY),                    # U_rz (HBM)
            pl.BlockSpec(memory_space=pl.ANY),                    # U_h  (HBM)
        ],
        out_specs=pl.BlockSpec((Tt, Bb, Hp), lambda b, t: (t, b, 0)),
        out_shape=jax.ShapeDtypeStruct((S, Bp, Hp), jnp.bfloat16),
        scratch_shapes=[
            pltpu.VMEM((Bb, Hp), jnp.float32),          # carried hidden state
            pltpu.VMEM(u_rz.shape, jnp.bfloat16),       # resident U_rz (1 copy)
            pltpu.VMEM(u_h.shape, jnp.bfloat16),        # resident U_h  (1 copy)
        ],
        compiler_params=pltpu.CompilerParams(
            dimension_semantics=("parallel", "arbitrary"),        # time is sequential
            vmem_limit_bytes=_vmem_limit_bytes()),
    )(xw, h0, u_rz, u_h)


# -----------------------------------------------------------------------------
# Parameter packing: fuse gates, fold biases, pad to (8, 128) tiles, bf16
# -----------------------------------------------------------------------------
def pack_params(params):
    emb = params["embedding"]                          # (V, E)
    H, V = params["dec_w"].shape
    E = emb.shape[1]
    Ep, Hp = _round_up(E, _LANE), _round_up(H, _LANE)

    cells = []
    for (w_r, w_z, w_h, u_r, u_z, u_h, b_r, b_z, b_h) in params["cells"]:
        in_p = _round_up(w_r.shape[0], _LANE)
        cells.append({
            # fused input-side projection (bf16); U-side biases folded into it
            "w": jnp.concatenate([_pad2d(w_r, in_p, Hp),
                                  _pad2d(w_z, in_p, Hp),
                                  _pad2d(w_h, in_p, Hp)],
                                 axis=1).astype(jnp.bfloat16),     # (in_p, 3Hp)
            "b": jnp.concatenate([_pad2d(b_r, 1, Hp),
                                  _pad2d(b_z, 1, Hp),
                                  _pad2d(b_h, 1, Hp)], axis=1),    # (1, 3Hp) f32
            # fused hidden-side weights (bf16, VMEM-resident in the recurrence)
            "u_rz": jnp.concatenate([_pad2d(u_r, Hp, Hp),
                                     _pad2d(u_z, Hp, Hp)],
                                    axis=1).astype(jnp.bfloat16),  # (Hp, 2Hp)
            "u_h": _pad2d(u_h, Hp, Hp).astype(jnp.bfloat16),       # (Hp, Hp)
        })

    return {
        "emb": _pad2d(emb, emb.shape[0], Ep).astype(jnp.bfloat16),
        "cells": cells,
        "dec_w": _pad2d(params["dec_w"], Hp, V).astype(jnp.bfloat16),  # (Hp, V)
        "dec_b": params["dec_b"],                                       # (1, V) f32
        "dims": (E, H, V),
    }


# -----------------------------------------------------------------------------
# Forward pass (matches GRU.forward semantics)
# -----------------------------------------------------------------------------
def gru_forward(inputs, hidden, packed, *, time_block=8):
    """inputs: (S, B) int32 token ids; hidden: (L, B, H) float32.
    Returns (logits (S, B, V), final hidden (L, B, H))."""
    S, B = inputs.shape
    L, _, H = hidden.shape
    _, _, V = packed["dims"]
    Hp = packed["cells"][0]["u_h"].shape[0]
    Bp = _round_up(B, _SUBLANE)

    # Embedding gather in plain JAX (bf16 table); dropout == identity.
    x = packed["emb"][inputs]                                   # (S, B, Ep) bf16
    x = jnp.pad(x, ((0, 0), (0, Bp - B), (0, 0)))               # (S, Bp, Ep)
    h0 = jnp.pad(hidden, ((0, 0), (0, Bp - B), (0, Hp - H)))    # (L, Bp, Hp) f32

    finals = []
    for l in range(L):
        cp = packed["cells"][l]
        # Hoisted input projection for all timesteps: one tiled bf16 GEMM.
        pre = linear(x.reshape(S * Bp, x.shape[-1]), cp["w"], cp["b"],
                     out_dtype=jnp.bfloat16, tn=512)
        # Sequential recurrence: time-blocked, weights resident, hidden in VMEM.
        h_all = gru_layer(pre.reshape(S, Bp, 3 * Hp), h0[l],
                          cp["u_rz"], cp["u_h"], time_block=time_block)
        finals.append(h_all[-1])
        x = h_all                                               # feeds next layer

    logits = linear(x.reshape(S * Bp, Hp), packed["dec_w"], packed["dec_b"],
                    out_dtype=jnp.float32, tm=256, tn=1024)
    logits = logits.reshape(S, Bp, V)[:, :B, :]
    hidden_out = jnp.stack(finals, axis=0)[:, :B, :H].astype(jnp.float32)
    return logits, hidden_out


# -----------------------------------------------------------------------------
# Deterministic parameter init (mirrors init_weights_uniform shapes/ranges)
# -----------------------------------------------------------------------------
def init_params(key, emb_size, hidden_size, vocab_size, num_layers):
    k = math.sqrt(1.0 / hidden_size)
    keys = jax.random.split(key, 2 + num_layers)

    embedding = jax.random.uniform(
        keys[0], (vocab_size, emb_size), jnp.float32, -0.1, 0.1)
    dec_w = jax.random.uniform(
        keys[1], (hidden_size, vocab_size), jnp.float32, -0.1, 0.1)
    dec_b = jnp.zeros((1, vocab_size), jnp.float32)

    def u(kk, shape):
        return jax.random.uniform(kk, shape, jnp.float32, -k, k)

    cells = []
    for l in range(num_layers):
        in_dim = emb_size if l == 0 else hidden_size
        ck = jax.random.split(keys[2 + l], 9)
        cells.append((
            u(ck[0], (in_dim, hidden_size)),       # W_r (no bias)
            u(ck[1], (in_dim, hidden_size)),       # W_z (no bias)
            u(ck[2], (in_dim, hidden_size)),       # W_h (no bias)
            u(ck[3], (hidden_size, hidden_size)),  # U_r
            u(ck[4], (hidden_size, hidden_size)),  # U_z
            u(ck[5], (hidden_size, hidden_size)),  # U_h
            u(ck[6], (1, hidden_size)),            # b_r
            u(ck[7], (1, hidden_size)),            # b_z
            u(ck[8], (1, hidden_size)),            # b_h
        ))
    return {"embedding": embedding, "dec_w": dec_w, "dec_b": dec_b, "cells": cells}


# -----------------------------------------------------------------------------
# Pure-JAX f32 reference (unfused, unpadded) for a correctness cross-check
# -----------------------------------------------------------------------------
def gru_forward_ref(inputs, hidden, params):
    x_embs = params["embedding"][inputs]
    hs = [hidden[l] for l in range(hidden.shape[0])]
    tops = []
    for t in range(inputs.shape[0]):
        x = x_embs[t]
        for l, cell in enumerate(params["cells"]):
            w_r, w_z, w_h, u_r, u_z, u_h, b_r, b_z, b_h = cell
            h = hs[l]
            r = jax.nn.sigmoid(x @ w_r + h @ u_r + b_r)
            z = jax.nn.sigmoid(x @ w_z + h @ u_z + b_z)
            hc = jnp.tanh(x @ w_h + (r * h) @ u_h + b_h)
            hs[l] = (1.0 - z) * h + z * hc
            x = hs[l]
        tops.append(x)
    top = jnp.stack(tops, axis=0)
    logits = top @ params["dec_w"] + params["dec_b"]
    return logits, jnp.stack(hs, axis=0)


# -----------------------------------------------------------------------------
if __name__ == "__main__":
    emb_size = 32
    hidden_size = 32
    seq_len = 8
    batch_size = 2
    vocab_size = 64
    num_layers = 2

    key = jax.random.PRNGKey(0)
    pkey, ikey = jax.random.split(key)

    params = init_params(pkey, emb_size, hidden_size, vocab_size, num_layers)
    packed = pack_params(params)

    inputs = jax.random.randint(
        ikey, (seq_len, batch_size), 0, vocab_size, dtype=jnp.int32)
    hidden0 = jnp.zeros((num_layers, batch_size, hidden_size), jnp.float32)

    logits, hidden_out = gru_forward(inputs, hidden0, packed)
    (logits, hidden_out) = jax.block_until_ready((logits, hidden_out))

    assert logits.shape == (seq_len, batch_size, vocab_size)
    assert hidden_out.shape == (num_layers, batch_size, hidden_size)
    assert bool(jnp.all(jnp.isfinite(logits)))

    # Cross-check against the unfused pure-JAX f32 reference (bf16 weights in
    # the kernel path -> 2e-2 tolerance per review).
    ref_logits, ref_hidden = gru_forward_ref(inputs, hidden0, params)
    np.testing.assert_allclose(np.asarray(logits), np.asarray(ref_logits),
                               rtol=2e-2, atol=2e-2)
    np.testing.assert_allclose(np.asarray(hidden_out), np.asarray(ref_hidden),
                               rtol=2e-2, atol=2e-2)

    print("KERNEL_OK")
</pallas_src>

<mosaic_0001>
module attributes {stable_mosaic.version = 11 : i64} {
  func.func @linear_kernel(%arg0: i32, %arg1: i32, %arg2: i32, %arg3: memref<64x128xbf16, #tpu.memory_space<vmem>>, %arg4: memref<128x384xbf16, #tpu.memory_space<vmem>>, %arg5: memref<1x384xf32, #tpu.memory_space<vmem>>, %arg6: memref<64x384xbf16, #tpu.memory_space<vmem>>, %arg7: memref<64x384xf32, #tpu.memory_space<vmem>>) attributes {dimension_semantics = [#tpu.dimension_semantics<parallel>, #tpu.dimension_semantics<parallel>, #tpu.dimension_semantics<arbitrary>], iteration_bounds = array<i64: 1, 1, 1>, scalar_prefetch = 0 : i64, scratch_operands = 1 : i64, tpu.core_type = #tpu.core_type<tc>, window_params = [{transform_indices = @transform_0, window_bounds = array<i64: 64, 128>}, {transform_indices = @transform_1, window_bounds = array<i64: 128, 384>}, {transform_indices = @transform_2, window_bounds = array<i64: 1, 384>}, {transform_indices = @transform_3, window_bounds = array<i64: 64, 384>}]} {
    %c0_i32 = arith.constant 0 : i32
    %0 = arith.cmpi eq, %arg2, %c0_i32 : i32
    %1 = arith.extui %0 : i1 to i32
    %c0_i32_0 = arith.constant 0 : i32
    %2 = arith.cmpi ne, %1, %c0_i32_0 : i32
    scf.if %2 {
      %cst_10 = arith.constant 0.000000e+00 : f32
      %12 = vector.broadcast %cst_10 : f32 to vector<64x384xf32>
      %c0_11 = arith.constant 0 : index
      %c0_12 = arith.constant 0 : index
      %13 = vector.load %arg7[%c0_11, %c0_12] : memref<64x384xf32, #tpu.memory_space<vmem>>, vector<64x384xf32>
      tpu.vector_store %arg7[%c0_11, %c0_12], %12 {strides = array<i32>} : memref<64x384xf32, #tpu.memory_space<vmem>>, vector<64x384xf32>,
    } else {
    }
    %c0 = arith.constant 0 : index
    %c0_1 = arith.constant 0 : index
    %3 = vector.load %arg7[%c0, %c0_1] : memref<64x384xf32, #tpu.memory_space<vmem>>, vector<64x384xf32>
    %c0_2 = arith.constant 0 : index
    %c0_3 = arith.constant 0 : index
    %4 = vector.load %arg3[%c0_2, %c0_3] : memref<64x128xbf16, #tpu.memory_space<vmem>>, vector<64x128xbf16>
    %c0_4 = arith.constant 0 : index
    %c0_5 = arith.constant 0 : index
    %5 = vector.load %arg4[%c0_4, %c0_5] : memref<128x384xbf16, #tpu.memory_space<vmem>>, vector<128x384xbf16>
    %cst = arith.constant dense<0.000000e+00> : vector<64x384xf32>
    %6 = tpu.matmul %4, %5, %cst {dimension_numbers = #tpu.dot_dimension_numbers<[1], [0], [0], [1], [0, 0, 1, 1], [], []>} : vector<64x128xbf16>, vector<128x384xbf16>, vector<64x384xf32> -> vector<64x384xf32>
    %7 = arith.addf %3, %6 : vector<64x384xf32>
    %c0_6 = arith.constant 0 : index
    %c0_7 = arith.constant 0 : index
    %8 = vector.load %arg7[%c0_6, %c0_7] : memref<64x384xf32, #tpu.memory_space<vmem>>, vector<64x384xf32>
    tpu.vector_store %arg7[%c0_6, %c0_7], %7 {strides = array<i32>} : memref<64x384xf32, #tpu.memory_space<vmem>>, vector<64x384xf32>,
    %c0_i32_8 = arith.constant 0 : i32
    %9 = arith.cmpi eq, %arg2, %c0_i32_8 : i32
    %10 = arith.extui %9 : i1 to i32
    %c0_i32_9 = arith.constant 0 : i32
    %11 = arith.cmpi ne, %10, %c0_i32_9 : i32
    scf.if %11 {
      %c0_10 = arith.constant 0 : index
      %c0_11 = arith.constant 0 : index
      %12 = vector.load %arg7[%c0_10, %c0_11] : memref<64x384xf32, #tpu.memory_space<vmem>>, vector<64x384xf32>
      %c0_12 = arith.constant 0 : index
      %c0_13 = arith.constant 0 : index
      %13 = vector.load %arg5[%c0_12, %c0_13] : memref<1x384xf32, #tpu.memory_space<vmem>>, vector<1x384xf32>
      %14 = vector.broadcast %13 : vector<1x384xf32> to vector<64x384xf32>
      %15 = arith.addf %12, %14 : vector<64x384xf32>
      %16 = arith.truncf %15 : vector<64x384xf32> to vector<64x384xbf16>
      %c0_14 = arith.constant 0 : index
      %c0_15 = arith.constant 0 : index
      %17 = vector.load %arg6[%c0_14, %c0_15] : memref<64x384xbf16, #tpu.memory_space<vmem>>, vector<64x384xbf16>
      tpu.vector_store %arg6[%c0_14, %c0_15], %16 {strides = array<i32>} : memref<64x384xbf16, #tpu.memory_space<vmem>>, vector<64x384xbf16>,
    } else {
    }
    return
  }
  func.func @transform_0(%arg0: i32, %arg1: i32, %arg2: i32) -> (i32, i32) {
    %c0_i32 = arith.constant 0 : i32
    return %arg1, %arg2 : i32, i32
  }
  func.func @transform_1(%arg0: i32, %arg1: i32, %arg2: i32) -> (i32, i32) {
    %c0_i32 = arith.constant 0 : i32
    return %arg2, %arg0 : i32, i32
  }
  func.func @transform_2(%arg0: i32, %arg1: i32, %arg2: i32) -> (i32, i32) {
    %c0_i32 = arith.constant 0 : i32
    %c0_i32_0 = arith.constant 0 : i32
    return %c0_i32, %arg0 : i32, i32
  }
  func.func @transform_3(%arg0: i32, %arg1: i32, %arg2: i32) -> (i32, i32) {
    %c0_i32 = arith.constant 0 : i32
    return %arg1, %arg0 : i32, i32
  }
}

</mosaic_0001>

<bundles_post_ra>
// kernel: tpu_custom_call.1
= control target key start
LH: loop header
LB: loop body
LE: loop exit
PB: predicated region body
PF: predicated region fallthrough
CT: control target
= control target key end

     0   :  { %8 = vsyncpa [#allocation4], 0  ;;  %s932_s0 = inlined_call_operand.hbm [shape: bf16[64,128], index: 0, kind: input, shape index: {}]   ;;  %s933_s1 = inlined_call_operand.hbm [shape: bf16[128,384], index: 1, kind: input, shape index: {}]   ;;  %s934_s2 = inlined_call_operand.vmem [shape: f32[1,384], index: 2, kind: input, shape index: {}]   ;;  %s935_s3 = inlined_call_operand.hbm [shape: bf16[64,384], index: 3, kind: output, shape index: {}]  }
   0x1   :  { %9 = vsyncpa [#allocation7], 0 }
   0x2   :  { %10 = vsyncpa [#allocation5], 0  ;;  %s862_s12 = smov [#allocation3]  }
   0x3   :  { %s16_s13 = sshll.u32 %s862_s12, 4  ;;  %s17_s13 = int_to_ptr.vmem [resolvable:$true] %s16_s13 }
   0x4   :  { %s804_s14 = scalar_lea.vmem %s17_s13, 512  ;;  %p809_p1 = scmp.lt.s32.totalorder %s17_s13, %s17_s13 }
   0x5   :  { %p805_p0 = scmp.ne.s32.totalorder %s17_s13, %s804_s14  ;;  %p810_p2 = scmp.lt.s32.totalorder %s804_s14, %s804_s14 }
   0x7   :  { %p811_p3 = por %p810_p2, %p809_p1 }
   0x9   :  { %p812_p4 = pnand %p811_p3, %p805_p0 }
   0xb   :  { %815 = shalt.err (!%p812_p4)
}
   0xc   :  { %s863_s15 = smov 64   ;;  %s864_s16 = smov 4  }
   0xd   :  { %22 = dma.hbm_to_vmem [thread:$0]  %s932_s0, 512, %s17_s13, [#allocation4], %s863_s15, %s863_s15, %s864_s16  }
   0xe   :  { %s865_s19 = smov [#allocation6]  }
   0xf   :  { %s28_s20 = sshll.u32 %s865_s19, 4  ;;  %s29_s20 = int_to_ptr.vmem [resolvable:$true] %s28_s20 }
  0x10   :  { %s824_s21 = scalar_lea.vmem %s29_s20, 3072  ;;  %p829_p6 = scmp.lt.s32.totalorder %s29_s20, %s29_s20 }
  0x11   :  { %p825_p5 = scmp.ne.s32.totalorder %s29_s20, %s824_s21  ;;  %p830_p7 = scmp.lt.s32.totalorder %s824_s21, %s824_s21 }
  0x13   :  { %p831_p8 = por %p830_p7, %p829_p6 }
  0x15   :  { %p832_p9 = pnand %p831_p8, %p825_p5 }
  0x17   :  { %835 = shalt.err (!%p832_p9)
}
  0x18   :  { %s866_s22 = smov 192   ;;  %s867_s23 = smov 12  }
  0x19   :  { %34 = dma.hbm_to_vmem [thread:$0]  %s933_s1, 3072, %s29_s20, [#allocation7], %s866_s22, %s866_s22, %s867_s23  }
  0x1a   :  { %856 = dma.done.wait [#allocation4], 512  }
  0x1b   :  { %857 = vsyncadd [#allocation4], 4294966784 }
  0x1c   :  { %858 = dma.done.wait [#allocation7], 3072  }
  0x1d   :  { %859 = vsyncadd [#allocation7], 4294964224  ;;  %v868_v0 = vmov 0   ;;  %v760_v1 = vld [vmem:[#allocation6 + $0xac] ss:$12 sps:$4 sm:$0xff]   ;;  %v790_v19 = vld [vmem:[#allocation3] sm:$0xff]   ;;  %v503_v29 = vlaneseq }
  0x1e   :  { %320 = vmatprep.mubr.bf16.mxu0 %v868_v0  ;;  %v762_v2 = vld [vmem:[#allocation6 + $0xa8] ss:$12 sps:$4 sm:$0xff]   ;;  %288 = vmatprep.subr.bf16.mxu0 %v760_v1  ;;  %v765_v4 = vld [vmem:[#allocation6 + $0x90] ss:$12 sps:$4 sm:$0xff]   ;;  %v768_v7 = vld [vmem:[#allocation6 + $0x78] ss:$12 sps:$4 sm:$0xff]  }
  0x1f   :  { %v763_v3 = vld [vmem:[#allocation6 + $0x94] ss:$12 sps:$4 sm:$0xff]   ;;  %289 = vmatpush1.bf16.msra.mxu0 %v762_v2  ;;  %v766_v5 = vld [vmem:[#allocation6 + $0x7c] ss:$12 sps:$4 sm:$0xff]   ;;  %v773_v8 = vld [vmem:[#allocation6 + $0x98] ss:$12 sps:$4 sm:$0xff]   ;;  %744 = vmatprep.mubr.bf16.mxu1 %v790_v19 }
  0x20   :  { %290 = vmatprep.subr.bf16.mxu0 %v763_v3  ;;  %v769_v6 = vld [vmem:[#allocation6 + $0xb0] ss:$12 sps:$4 sm:$0xff]   ;;  %v777_v10 = vld [vmem:[#allocation6 + $0x80] ss:$12 sps:$4 sm:$0xff]   ;;  %v781_v13 = vld [vmem:[#allocation6 + $0x68] ss:$12 sps:$4 sm:$0xff]  }
  0x21   :  { %728 = vmatprep.subr.bf16.mxu1 %v769_v6  ;;  %v770_v9 = vld [vmem:[#allocation6 + $0x64] ss:$12 sps:$4 sm:$0xff]   ;;  %v772_v11 = vld [vmem:[#allocation6 + $0x60] ss:$12 sps:$4 sm:$0xff]   ;;  %v776_v14 = vld [vmem:[#allocation6 + $0x48] ss:$12 sps:$4 sm:$0xff]  }
  0x22   :  { %729 = vmatpush3.bf16.msra.mxu1 %v769_v6  ;;  %v774_v12 = vld [vmem:[#allocation6 + $0x4c] ss:$12 sps:$4 sm:$0xff]   ;;  %v778_v15 = vld [vmem:[#allocation6 + $0x34] ss:$12 sps:$4 sm:$0xff]   ;;  %v785_v16 = vld [vmem:[#allocation6 + $0x50] ss:$12 sps:$4 sm:$0xff]  }
  0x23   :  { %291 = vmatpush1.bf16.msra.mxu0 %v765_v4  ;;  %730 = vmatprep.subr.bf16.mxu1 %v773_v8  ;;  %v780_v17 = vld [vmem:[#allocation6 + $0x30] ss:$12 sps:$4 sm:$0xff]   ;;  %v789_v20 = vld [vmem:[#allocation6 + $0x38] ss:$12 sps:$4 sm:$0xff]   ;;  %v791_v23 = vld [vmem:[#allocation6 + $0x20] ss:$12 sps:$4 sm:$0xff]  }
  0x24   :  { %292 = vmatprep.subr.bf16.mxu0 %v766_v5  ;;  %v782_v18 = vld [vmem:[#allocation6 + $0x1c] ss:$12 sps:$4 sm:$0xff]   ;;  %v784_v21 = vld [vmem:[#allocation6 + $0x18] ss:$12 sps:$4 sm:$0xff]   ;;  %v788_v24 = vld [vmem:[#allocation6] ss:$12 sps:$4 sm:$0xff]  }
  0x25   :  { %v786_v22 = vld [vmem:[#allocation6 + $0x4] ss:$12 sps:$4 sm:$0xff]   ;;  %v792_v25 = vld [vmem:[#allocation6 + $0x8] ss:$12 sps:$4 sm:$0xff]   ;;  %v795_v28 = vld [vmem:[#allocation3 + $0x18] sm:$0xff]   ;;  %v504_v30 = vshrl.u32 %v503_v29, 7 }
  0x26   :  { %731 = vmatpush3.bf16.msra.mxu1 %v773_v8  ;;  %v794_v26 = vld [vmem:[#allocation3 + $0x10] sm:$0xff]   ;;  %v793_v27 = vld [vmem:[#allocation3 + $0x8] sm:$0xff]   ;;  %v501_v33 = vld [vmem:[%s934_s2] sm:$0x7]  ;;  %s869_s2 = smov [#allocation8]  }
  0x27   :  { %293 = vmatpush1.bf16.msra.mxu0 %v768_v7  ;;  %732 = vmatprep.subr.bf16.mxu1 %v777_v10  ;;  %v505_v31 = vsub.s32 0, %v504_v30  ;;  %v509_v32 = vsub.s32 1, %v504_v30  ;;  %v513_v34 = vsub.s32 2, %v504_v30  ;;  %s643_s26 = sshll.u32 %s869_s2, 4  ;;  %s644_s26 = int_to_ptr.vmem [resolvable:$true] %s643_s26 }
  0x28   :  { %294 = vmatprep.subr.bf16.mxu0 %v770_v9  ;;  %s836_s27 = scalar_lea.vmem %s644_s26, 1536  ;;  %p841_p11 = scmp.lt.s32.totalorder %s644_s26, %s644_s26 }
  0x29   :  { %v906_v35 = vrot.slane %v501_v33, %v505_v31  ;;  %v908_v36 = vrot.slane %v501_v33, %v509_v32  ;;  %v514_v38 = vrot.slane %v501_v33, %v513_v34  ;;  %p837_p10 = scmp.ne.s32.totalorder %s644_s26, %s836_s27  ;;  %p842_p12 = scmp.lt.s32.totalorder %s836_s27, %s836_s27 }
  0x2a   :  { %733 = vmatpush3.bf16.msra.mxu1 %v777_v10 }
  0x2b   :  { %295 = vmatpush1.bf16.msra.mxu0 %v772_v11  ;;  %734 = vmatprep.subr.bf16.mxu1 %v781_v13  ;;  %p843_p13 = por %p842_p12, %p841_p11 }
  0x2c   :  { %296 = vmatprep.subr.bf16.mxu0 %v774_v12 }
  0x2d   :  { %p844_p0 = pnand %p843_p13, %p837_p10 }
  0x2e   :  { %735 = vmatpush3.bf16.msra.mxu1 %v781_v13 }
  0x2f   :  { %297 = vmatpush1.bf16.msra.mxu0 %v776_v14  ;;  %736 = vmatprep.subr.bf16.mxu1 %v785_v16 }
  0x30   :  { %298 = vmatprep.subr.bf16.mxu0 %v778_v15 }
  0x32   :  { %737 = vmatpush3.bf16.msra.mxu1 %v785_v16 }
  0x33   :  { %299 = vmatpush1.bf16.msra.mxu0 %v780_v17  ;;  %738 = vmatprep.subr.bf16.mxu1 %v789_v20 }
  0x34   :  { %300 = vmatprep.subr.bf16.mxu0 %v782_v18 }
  0x36   :  { %739 = vmatpush3.bf16.msra.mxu1 %v789_v20 }
  0x37   :  { %301 = vmatpush1.bf16.msra.mxu0 %v784_v21  ;;  %740 = vmatprep.subr.bf16.mxu1 %v791_v23 }
  0x38   :  { %302 = vmatprep.subr.bf16.mxu0 %v786_v22 }
  0x3a   :  { %741 = vmatpush3.bf16.msra.mxu1 %v791_v23 }
  0x3b   :  { %303 = vmatpush1.bf16.msra.mxu0 %v788_v24  ;;  %742 = vmatprep.subr.bf16.mxu1 %v792_v25 }
  0x3e   :  { %321 = vmatmul.mubr.bf16.vlgmr.msra.gmra.mxu0 %v790_v19  ;;  %743 = vmatpush3.bf16.msra.mxu1 %v792_v25 }
  0x3f   :  { %330 = vmatprep.mubr.bf16.mxu0 %v868_v0 }
  0x41   :  { %745 = vmatmul.mubr.bf16.vlgmr.msra.gmra.mxu1 %v793_v27 }
  0x42   :  { %748 = vmatprep.mubr.bf16.mxu1 %v794_v26 }
  0x46   :  { %331 = vmatmul.mubr.bf16.gmra.mxu0 %v793_v27 }
  0x47   :  { %340 = vmatprep.mubr.bf16.mxu0 %v868_v0 }
  0x49   :  { %749 = vmatmul.mubr.bf16.gmra.mxu1 %v795_v28 }
  0x4e   :  { %341 = vmatmul.mubr.bf16.gmra.mxu0 %v794_v26 }
  0x4f   :  { %350 = vmatprep.mubr.bf16.mxu0 %v868_v0 }
  0x56   :  { %351 = vmatmul.mubr.bf16.gmra.mxu0 %v795_v28 }
  0xfe   :  { %v322_v37 = vpop.f32.mrf.mxu0 }
  0xff   :  { %v518_v40 = vadd.f32 %v906_v35, %v322_v37 }
 0x100   :  { %v324_v39 = vpop.f32.mrf.mxu0 }
 0x101   :  { %v519_v41 = vadd.f32 %v908_v36, %v324_v39  ;;  %v746_v43 = vpop.f32.mrf.mxu1 }
 0x102   :  { %v326_v42 = vpop.f32.mrf.mxu0  ;;  %v526_v45 = vadd.f32 %v746_v43, %v514_v38 }
 0x103   :  { %v700_v44 = vpack.c.bf16 %v519_v41, %v518_v40  ;;  %v395_v47 = vpop.f32.mrf.mxu1  ;;  %v521_v48 = vadd.f32 %v906_v35, %v326_v42 }
 0x104   :  { %v328_v46 = vpop.f32.mrf.mxu0  ;;  %v705_v50 = vpack.c.bf16 %v526_v45, %v526_v45  ;;  %v520_v51 = vadd.f32 %v514_v38, %v395_v47 }
 0x105   :  { %622 = vst [vmem:[#allocation8] sm:$0xff] %v700_v44  ;;  %v522_v49 = vadd.f32 %v908_v36, %v328_v46  ;;  %v747_v53 = vpop.f32.mrf.mxu1 }
 0x106   :  { %v332_v52 = vpop.f32.mrf.mxu0  ;;  %627 = vst [vmem:[#allocation8 + $0x20] sm:$0xf] %v705_v50  ;;  %v701_v55 = vpack.c.bf16 %v520_v51, %v520_v51  ;;  %v529_v56 = vadd.f32 %v747_v53, %v514_v38 }
 0x107   :  { %v702_v54 = vpack.c.bf16 %v522_v49, %v521_v48  ;;  %v398_v58 = vpop.f32.mrf.mxu1  ;;  %v524_v59 = vadd.f32 %v906_v35, %v332_v52 }
 0x108   :  { %v334_v57 = vpop.f32.mrf.mxu0  ;;  %623 = vst [vmem:[#allocation8 + $0x8] sm:$0xf] %v701_v55  ;;  %v707_v61 = vpack.c.bf16 %v529_v56, %v529_v56  ;;  %v523_v62 = vadd.f32 %v514_v38, %v398_v58 }
 0x109   :  { %624 = vst [vmem:[#allocation8 + $0xc] sm:$0xff] %v702_v54  ;;  %v525_v60 = vadd.f32 %v908_v36, %v334_v57  ;;  %v750_v0 = vpop.f32.mrf.mxu1 }
 0x10a   :  { %v336_v63 = vpop.f32.mrf.mxu0  ;;  %629 = vst [vmem:[#allocation8 + $0x2c] sm:$0xf] %v707_v61  ;;  %v703_v2 = vpack.c.bf16 %v523_v62, %v523_v62  ;;  %v538_v3 = vadd.f32 %v750_v0, %v514_v38 }
 0x10b   :  { %v704_v1 = vpack.c.bf16 %v525_v60, %v524_v59  ;;  %v411_v5 = vpop.f32.mrf.mxu1  ;;  %v527_v6 = vadd.f32 %v906_v35, %v336_v63 }
 0x10c   :  { %v338_v4 = vpop.f32.mrf.mxu0  ;;  %625 = vst [vmem:[#allocation8 + $0x14] sm:$0xf] %v703_v2  ;;  %v713_v8 = vpack.c.bf16 %v538_v3, %v538_v3  ;;  %v532_v9 = vadd.f32 %v514_v38, %v411_v5 }
 0x10d   :  { %626 = vst [vmem:[#allocation8 + $0x18] sm:$0xff] %v704_v1  ;;  %v528_v7 = vadd.f32 %v908_v36, %v338_v4  ;;  %v751_v11 = vpop.f32.mrf.mxu1 }
 0x10e   :  { %v342_v10 = vpop.f32.mrf.mxu0  ;;  %635 = vst [vmem:[#allocation8 + $0x50] sm:$0xf] %v713_v8  ;;  %v709_v13 = vpack.c.bf16 %v532_v9, %v532_v9  ;;  %v541_v14 = vadd.f32 %v751_v11, %v514_v38 }
 0x10f   :  { %v706_v12 = vpack.c.bf16 %v528_v7, %v527_v6  ;;  %v414_v16 = vpop.f32.mrf.mxu1  ;;  %v530_v17 = vadd.f32 %v906_v35, %v342_v10 }
 0x110   :  { %v344_v15 = vpop.f32.mrf.mxu0  ;;  %631 = vst [vmem:[#allocation8 + $0x38] sm:$0xf] %v709_v13  ;;  %v715_v19 = vpack.c.bf16 %v541_v14, %v541_v14  ;;  %v535_v20 = vadd.f32 %v514_v38, %v414_v16 }
 0x111   :  { %628 = vst [vmem:[#allocation8 + $0x24] sm:$0xff] %v706_v12  ;;  %v531_v18 = vadd.f32 %v908_v36, %v344_v15 }
 0x112   :  { %v346_v21 = vpop.f32.mrf.mxu0  ;;  %637 = vst [vmem:[#allocation8 + $0x5c] sm:$0xf] %v715_v19  ;;  %v711_v23 = vpack.c.bf16 %v535_v20, %v535_v20 }
 0x113   :  { %v708_v22 = vpack.c.bf16 %v531_v18, %v530_v17  ;;  %v533_v25 = vadd.f32 %v906_v35, %v346_v21 }
 0x114   :  { %v348_v24 = vpop.f32.mrf.mxu0  ;;  %633 = vst [vmem:[#allocation8 + $0x44] sm:$0xf] %v711_v23 }
 0x115   :  { %630 = vst [vmem:[#allocation8 + $0x30] sm:$0xff] %v708_v22  ;;  %v534_v26 = vadd.f32 %v908_v36, %v348_v24 }
 0x116   :  { %v352_v27 = vpop.f32.mrf.mxu0 }
 0x117   :  { %v710_v28 = vpack.c.bf16 %v534_v26, %v533_v25  ;;  %v536_v30 = vadd.f32 %v906_v35, %v352_v27 }
 0x118   :  { %v354_v29 = vpop.f32.mrf.mxu0 }
 0x119   :  { %632 = vst [vmem:[#allocation8 + $0x3c] sm:$0xff] %v710_v28  ;;  %v537_v31 = vadd.f32 %v908_v36, %v354_v29 }
 0x11a   :  { %v356_v32 = vpop.f32.mrf.mxu0 }
 0x11b   :  { %v712_v33 = vpack.c.bf16 %v537_v31, %v536_v30  ;;  %v539_v37 = vadd.f32 %v906_v35, %v356_v32 }
 0x11c   :  { %v358_v34 = vpop.f32.mrf.mxu0 }
 0x11d   :  { %634 = vst [vmem:[#allocation8 + $0x48] sm:$0xff] %v712_v33  ;;  %v540_v38 = vadd.f32 %v908_v36, %v358_v34 }
 0x11f   :  { %v714_v39 = vpack.c.bf16 %v540_v38, %v539_v37 }
 0x121   :  { %636 = vst [vmem:[#allocation8 + $0x54] sm:$0xff] %v714_v39 }
 0x122   :  { %847 = shalt.err (!%p844_p0)
}
 0x123   :  { %649 = dma.vmem_to_hbm [thread:$0]  %s644_s26, 1536, %s935_s3, [#allocation5], %s866_s22, %s866_s22, %s867_s23  }
 0x124   :  { %860 = dma.done.wait [#allocation5], 1536  }
 0x125   :  { %861 = vsyncadd [#allocation5], 4294965760 }
 0x126   :  { %653 = vsyncpa [#allocation4], 1 }
 0x127   :  { %654 = vsyncpa [#allocation7], 1 }
 0x128   :  { %655 = vsyncpa [#allocation5], 1 }

</bundles_post_ra>
